<compile_context>
chip_gen: v7x
topology: tpu7x:2x2x1
jax: 0.10.0
libtpu: 0.0.40
codegen_flags: <defaults>
</compile_context>

<pallas_src>
from functools import partial

import jax
import jax.numpy as jnp
from jax.experimental import pallas as pl
from jax.experimental.pallas import tpu as pltpu  # noqa: F401  (TPU backend; used on the scaling path)


def _round_up(n: int, m: int) -> int:
    return ((n + m - 1) // m) * m


def mlp_kernel(x_ref, p_ref, o_ref, *, in_dim, hid_p, out_p, r_b1, r_w2, r_b2):
    # All slices below are static and start on (8,128) tile boundaries -> pure
    # views, no relayout / VMEM copies.
    w1 = p_ref[0:in_dim, 0:hid_p]            # (in_dim, hid_p)  lane-dense
    b1 = p_ref[r_b1:r_b1 + 1, 0:hid_p]       # (1, hid_p)
    w2 = p_ref[r_w2:r_w2 + hid_p, 0:out_p]   # (hid_p, out_p)
    b2 = p_ref[r_b2:r_b2 + 1, 0:out_p]       # (1, out_p)

    # Linear1 + bias + ReLU (Dropout p=0.0 is the identity -> elided).
    h = jnp.dot(x_ref[...], w1, preferred_element_type=jnp.float32)
    h = jnp.maximum(h + b1, 0.0)             # (B, hid_p), padded lanes stay 0
    # Linear2 + bias. Padded hidden lanes are zero and padded w2 rows/cols are
    # zero, so padded output lanes come out exactly zero.
    o = jnp.dot(h, w2, preferred_element_type=jnp.float32)
    o_ref[...] = (o + b2).astype(o_ref.dtype)


def prepare_params(v1, g1, b1, v2, g2, b2, lane: int = 128, sublane: int = 8):
    """One-time parameter setup (NOT on the per-call hot path).

    PyTorch weight_norm(dim=None): W_eff = g * V / ||V||_F  (scalar g,
    Frobenius norm) -- matches the SimpleMLP spec.

    Packs w1^T, b1, w2^T, b2 into a single (rows, 128) f32 slab whose segments
    all start on 8-row (sublane-tile) boundaries, zero-padded so hidden and
    output dims are lane-dense (multiples of 128).
    """
    hid_dim, in_dim = v1.shape
    out_dim, _ = v2.shape
    hid_p = _round_up(hid_dim, lane)
    out_p = _round_up(out_dim, lane)
    lane_p = max(hid_p, out_p)

    w1 = (g1 / jnp.linalg.norm(v1)) * v1.T          # (in_dim, hid_dim)
    w2 = (g2 / jnp.linalg.norm(v2)) * v2.T          # (hid_dim, out_dim)

    in_rows = _round_up(in_dim, sublane)
    r_b1 = in_rows                                  # bias1 row (8-aligned)
    r_w2 = r_b1 + sublane                           # w2 start   (8-aligned)
    r_b2 = r_w2 + hid_p                             # bias2 row  (8-aligned)
    rows = r_b2 + sublane

    slab = jnp.zeros((rows, lane_p), jnp.float32)
    slab = slab.at[:in_dim, :hid_dim].set(w1)
    slab = slab.at[r_b1, :hid_dim].set(b1)
    slab = slab.at[r_w2:r_w2 + hid_dim, :out_dim].set(w2)
    slab = slab.at[r_b2, :out_dim].set(b2)

    meta = dict(hid_p=hid_p, out_p=out_p, r_b1=r_b1, r_w2=r_w2, r_b2=r_b2,
                out_dim=out_dim)
    return slab, meta


@partial(jax.jit, static_argnames=("hid_p", "out_p", "r_b1", "r_w2", "r_b2"))
def simple_mlp_forward(x, packed_params, *, hid_p, out_p, r_b1, r_w2, r_b2):
    """x: (B, in_dim) f32; packed_params: (rows, lane_p) slab from prepare_params.

    Returns the lane-dense padded output (B, out_p); lanes >= out_dim are exact
    zeros.  Consumers slice (or better, fuse) downstream -- keeping the slice
    off this launch-overhead-bound hot path.
    """
    B, in_dim = x.shape
    rows, lane_p = packed_params.shape

    kernel = partial(mlp_kernel, in_dim=in_dim, hid_p=hid_p, out_p=out_p,
                     r_b1=r_b1, r_w2=r_w2, r_b2=r_b2)

    flops = 2 * B * (in_dim * hid_p + hid_p * out_p)
    bytes_accessed = 4 * (x.size + packed_params.size + B * out_p)
    cost = pl.CostEstimate(flops=flops, transcendentals=0,
                           bytes_accessed=bytes_accessed)

    return pl.pallas_call(
        kernel,
        out_shape=jax.ShapeDtypeStruct((B, out_p), x.dtype),
        in_specs=[
            pl.BlockSpec((B, in_dim), lambda: (0, 0)),
            pl.BlockSpec((rows, lane_p), lambda: (0, 0)),
        ],
        out_specs=pl.BlockSpec((B, out_p), lambda: (0, 0)),
        cost_estimate=cost,
    )(x, packed_params)


def reference_forward(x, v1, g1, b1, v2, g2, b2):
    w1 = g1 * v1 / jnp.linalg.norm(v1)
    w2 = g2 * v2 / jnp.linalg.norm(v2)
    h = jnp.maximum(x @ w1.T + b1, 0.0)
    return h @ w2.T + b2


if __name__ == "__main__":
    B, in_dim, hid_dim, out_dim = 8, 32, 64, 16

    key = jax.random.PRNGKey(0)
    k = jax.random.split(key, 5)
    x = jax.random.normal(k[0], (B, in_dim), dtype=jnp.float32)

    # Deterministic params (nn.Linear convention: weight is (out, in)).
    v1 = jax.random.normal(k[1], (hid_dim, in_dim), dtype=jnp.float32) * 0.1
    b1 = jax.random.normal(k[2], (hid_dim,), dtype=jnp.float32) * 0.1
    g1 = jnp.float32(1.5)   # weight_norm 'g' (scalar, dim=None)
    v2 = jax.random.normal(k[3], (out_dim, hid_dim), dtype=jnp.float32) * 0.1
    b2 = jax.random.normal(k[4], (out_dim,), dtype=jnp.float32) * 0.1
    g2 = jnp.float32(0.7)

    # One-time weight_norm + packing + padding prep (off the per-call path).
    packed, meta = prepare_params(v1, g1, b1, v2, g2, b2)
    packed = jax.block_until_ready(packed)

    out_padded = simple_mlp_forward(
        x, packed,
        hid_p=meta["hid_p"], out_p=meta["out_p"],
        r_b1=meta["r_b1"], r_w2=meta["r_w2"], r_b2=meta["r_b2"])
    out_padded = jax.block_until_ready(out_padded)

    # Consumer-side layout plumbing (NOT on the kernel hot path): the padded
    # lanes are exact zeros, so slicing recovers the module's (B, out_dim) output.
    out = out_padded[:, :meta["out_dim"]]

    ref = reference_forward(x, v1, g1, b1, v2, g2, b2)
    assert out.shape == (B, out_dim)
    assert jnp.allclose(out, ref, atol=1e-5, rtol=1e-5), "mismatch vs reference"
    assert jnp.all(out_padded[:, meta["out_dim"]:] == 0.0), "padded lanes not zero"

    print("KERNEL_OK")
</pallas_src>

<mosaic_0001>
module attributes {stable_mosaic.version = 11 : i64} {
  func.func @mlp_kernel(%arg0: memref<8x32xf32, #tpu.memory_space<vmem>>, %arg1: memref<176x128xf32, #tpu.memory_space<vmem>>, %arg2: memref<8x128xf32, #tpu.memory_space<vmem>>) attributes {dimension_semantics = [], scalar_prefetch = 0 : i64, scratch_operands = 0 : i64, tpu.core_type = #tpu.core_type<tc>} {
    %c0 = arith.constant 0 : index
    %c0_0 = arith.constant 0 : index
    %0 = vector.load %arg1[%c0, %c0_0] : memref<176x128xf32, #tpu.memory_space<vmem>>, vector<32x128xf32>
    %c32 = arith.constant 32 : index
    %c0_1 = arith.constant 0 : index
    %1 = vector.load %arg1[%c32, %c0_1] : memref<176x128xf32, #tpu.memory_space<vmem>>, vector<1x128xf32>
    %c40 = arith.constant 40 : index
    %c0_2 = arith.constant 0 : index
    %2 = vector.load %arg1[%c40, %c0_2] : memref<176x128xf32, #tpu.memory_space<vmem>>, vector<128x128xf32>
    %c168 = arith.constant 168 : index
    %c0_3 = arith.constant 0 : index
    %3 = vector.load %arg1[%c168, %c0_3] : memref<176x128xf32, #tpu.memory_space<vmem>>, vector<1x128xf32>
    %c0_4 = arith.constant 0 : index
    %c0_5 = arith.constant 0 : index
    %4 = vector.load %arg0[%c0_4, %c0_5] : memref<8x32xf32, #tpu.memory_space<vmem>>, vector<8x32xf32>
    %cst = arith.constant dense<0.000000e+00> : vector<8x128xf32>
    %5 = tpu.matmul %4, %0, %cst {dimension_numbers = #tpu.dot_dimension_numbers<[1], [0], [0], [1], [0, 0, 1, 1], [], []>} : vector<8x32xf32>, vector<32x128xf32>, vector<8x128xf32> -> vector<8x128xf32>
    %6 = vector.broadcast %1 : vector<1x128xf32> to vector<8x128xf32>
    %7 = arith.addf %5, %6 : vector<8x128xf32>
    %cst_6 = arith.constant 0.000000e+00 : f32
    %8 = vector.broadcast %cst_6 : f32 to vector<8x128xf32>
    %9 = arith.maximumf %7, %8 : vector<8x128xf32>
    %cst_7 = arith.constant dense<0.000000e+00> : vector<8x128xf32>
    %10 = tpu.matmul %9, %2, %cst_7 {dimension_numbers = #tpu.dot_dimension_numbers<[1], [0], [0], [1], [0, 0, 1, 1], [], []>} : vector<8x128xf32>, vector<128x128xf32>, vector<8x128xf32> -> vector<8x128xf32>
    %11 = vector.broadcast %3 : vector<1x128xf32> to vector<8x128xf32>
    %12 = arith.addf %10, %11 : vector<8x128xf32>
    %c0_8 = arith.constant 0 : index
    %c0_9 = arith.constant 0 : index
    %13 = vector.load %arg2[%c0_8, %c0_9] : memref<8x128xf32, #tpu.memory_space<vmem>>, vector<8x128xf32>
    tpu.vector_store %arg2[%c0_8, %c0_9], %12 {strides = array<i32>} : memref<8x128xf32, #tpu.memory_space<vmem>>, vector<8x128xf32>,
    return
  }
}

</mosaic_0001>

<bundles_post_ra>
// kernel: simple_mlp_forward.1
= control target key start
LH: loop header
LB: loop body
LE: loop exit
PB: predicated region body
PF: predicated region fallthrough
CT: control target
= control target key end

     0   :  { %7 = vsyncpa [#allocation3], 0  ;;  %s478_s0 = inlined_call_operand.hbm [shape: f32[8,32], index: 0, kind: input, shape index: {}]   ;;  %s479_s1 = inlined_call_operand.hbm [shape: f32[176,128], index: 1, kind: input, shape index: {}]   ;;  %s480_s2 = inlined_call_operand.hbm [shape: f32[8,128], index: 2, kind: output, shape index: {}]  }
   0x1   :  { %8 = vsyncpa [#allocation6], 0 }
   0x2   :  { %9 = vsyncpa [#allocation4], 0  ;;  %s412_s9 = smov [#allocation2]   ;;  %s413_s11 = smov [#allocation5]  }
   0x3   :  { %s16_s10 = sshll.u32 %s412_s9, 4  ;;  %s25_s12 = sshll.u32 %s413_s11, 4  ;;  %s17_s10 = int_to_ptr.vmem [resolvable:$true] %s16_s10  ;;  %s435_s12 = int_to_ptr.vmem [resolvable:$true] %s25_s12 }
   0x4   :  { %s340_s15 = scalar_lea.hbm %s478_s0, 128 }
   0x5   :  { %p341_p0 = scmp.ne.s32.totalorder %s478_s0, %s340_s15  ;;  %p344_p1 = scmp.lt.u32.totalorder %s340_s15, %s478_s0 }
   0x7   :  { %p346_p2 = pnand %p344_p1, %p341_p0 }
   0x9   :  { %349 = shalt.err (!%p346_p2)
}
   0xa   :  { %s350_s20 = scalar_lea.vmem %s17_s10, 128  ;;  %p355_p4 = scmp.lt.s32.totalorder %s17_s10, %s17_s10 }
   0xb   :  { %p351_p3 = scmp.ne.s32.totalorder %s17_s10, %s350_s20  ;;  %p356_p5 = scmp.lt.s32.totalorder %s350_s20, %s350_s20 }
   0xd   :  { %p357_p6 = por %p356_p5, %p355_p4 }
   0xf   :  { %p358_p7 = pnand %p357_p6, %p351_p3 }
  0x11   :  { %361 = shalt.err (!%p358_p7)
}
  0x12   :  { %19 = dma.hbm_to_vmem [thread:$0]  %s478_s0, 128, %s17_s10, [#allocation3]  }
  0x13   :  { %s362_s25 = scalar_lea.hbm %s479_s1, 2816 }
  0x14   :  { %p363_p8 = scmp.ne.s32.totalorder %s479_s1, %s362_s25  ;;  %p366_p9 = scmp.lt.u32.totalorder %s362_s25, %s479_s1 }
  0x16   :  { %p368_p10 = pnand %p366_p9, %p363_p8 }
  0x18   :  { %371 = shalt.err (!%p368_p10)
}
  0x19   :  { %s372_s30 = scalar_lea.vmem %s435_s12, 2816  ;;  %p377_p12 = scmp.lt.s32.totalorder %s435_s12, %s435_s12 }
  0x1a   :  { %p373_p11 = scmp.ne.s32.totalorder %s435_s12, %s372_s30  ;;  %p378_p13 = scmp.lt.s32.totalorder %s372_s30, %s372_s30 }
  0x1c   :  { %p379_p0 = por %p378_p13, %p377_p12 }
  0x1e   :  { %p380_p1 = pnand %p379_p0, %p373_p11 }
  0x20   :  { %383 = shalt.err (!%p380_p1)
}
  0x21   :  { %s414_s0 = smov 128   ;;  %s415_s3 = smov 8  }
  0x22   :  { %31 = dma.hbm_to_vmem [thread:$0]  %s479_s1, 2816, %s435_s12, [#allocation6], %s414_s0, %s414_s0, %s415_s3  }
  0x23   :  { %406 = dma.done.wait [#allocation3], 128  }
  0x24   :  { %407 = vsyncadd [#allocation3], 4294967168 }
  0x25   :  { %408 = dma.done.wait [#allocation6], 2816  }
  0x26   :  { %409 = vsyncadd [#allocation6], 4294964480  ;;  %v416_v0 = vmov 0.0|0.0   ;;  %vm417_vm0 = vmmov 0   ;;  %v418_v1 = vmov 0.0   ;;  %v38_v2 = vld [vmem:[#allocation5] sm:$0xff] }
  0x27   :  { %302 = vmatprep.subr.bf16.mxu0 %v416_v0  ;;  %264 = vmatprep.mubr.msk.f32.mxu0 %vm417_vm0, %v418_v1  ;;  %v39_v3 = vld [vmem:[#allocation5 + $0x8] sm:$0xff]  ;;  %v40_v4 = vld [vmem:[#allocation5 + $0x10] sm:$0xff]  ;;  %v41_v6 = vld [vmem:[#allocation5 + $0x18] sm:$0xff]  ;;  %vm65_vm1 = vcmask 261120   ;;  %s419_s1 = smov [#allocation7]  }
  0x28   :  { %308 = vmatprep.subr.bf16.mxu1 %v416_v0  ;;  %299 = vmatprep.mubr.msk.f32.mxu1 %vm417_vm0, %v418_v1  ;;  %v303_v5 = vpack.c.bf16 %v39_v3, %v38_v2  ;;  %v43_v7 = vld [vmem:[#allocation5 + $0x28] sm:$0xff]  ;;  %v44_v8 = vld [vmem:[#allocation5 + $0x30] sm:$0xff]  ;;  %v45_v9 = vld [vmem:[#allocation5 + $0x38] sm:$0xff]  ;;  %v306_v11 = vpack.c.bf16 %v41_v6, %v40_v4  ;;  %s221_s6 = sshll.u32 %s419_s1, 4  ;;  %s222_s6 = int_to_ptr.vmem [resolvable:$true] %s221_s6 }
  0x29   :  { %v46_v10 = vld [vmem:[#allocation5 + $0x40] sm:$0xff]  ;;  %v309_v12 = vpack.c.bf16 %v44_v8, %v43_v7  ;;  %v47_v14 = vld [vmem:[#allocation5 + $0x48] sm:$0xff]  ;;  %v48_v15 = vld [vmem:[#allocation5 + $0x50] sm:$0xff]  ;;  %s384_s7 = scalar_lea.vmem %s222_s6, 128  ;;  %p389_p3 = scmp.lt.s32.totalorder %s222_s6, %s222_s6 }
  0x2a   :  { %304 = vmatpush3.bf16.msra.mxu0 %v303_v5  ;;  %v312_v13 = vpack.c.bf16 %v46_v10, %v45_v9  ;;  %v60_v16 = vld [vmem:[#allocation2] sm:$0xff]  ;;  %v315_v17 = vpack.c.bf16 %v48_v15, %v47_v14  ;;  %v50_v19 = vld [vmem:[#allocation5 + $0x60] sm:$0xff]  ;;  %v51_v21 = vld [vmem:[#allocation5 + $0x68] sm:$0xff]  ;;  %p385_p2 = scmp.ne.s32.totalorder %s222_s6, %s384_s7  ;;  %p390_p4 = scmp.lt.s32.totalorder %s384_s7, %s384_s7 }
  0x2b   :  { %305 = vmatprep.subr.bf16.mxu0 %v416_v0  ;;  %310 = vmatpush3.bf16.msra.mxu1 %v309_v12  ;;  %v49_v18 = vld [vmem:[#allocation5 + $0x58] sm:$0xff]  ;;  %v52_v22 = vld [vmem:[#allocation5 + $0x70] sm:$0xff]  ;;  %v54_v25 = vld [vmem:[#allocation5 + $0x80] sm:$0xff] }
  0x2c   :  { %311 = vmatprep.subr.bf16.mxu1 %v416_v0  ;;  %v318_v20 = vpack.c.bf16 %v50_v19, %v49_v18  ;;  %v321_v23 = vpack.c.bf16 %v52_v22, %v51_v21  ;;  %v53_v24 = vld [vmem:[#allocation5 + $0x78] sm:$0xff]  ;;  %v55_v27 = vld [vmem:[#allocation5 + $0x88] sm:$0xff]  ;;  %v56_v28 = vld [vmem:[#allocation5 + $0x90] sm:$0xff]  ;;  %p391_p5 = por %p390_p4, %p389_p3 }
  0x2d   :  { %v324_v26 = vpack.c.bf16 %v54_v25, %v53_v24  ;;  %v327_v29 = vpack.c.bf16 %v56_v28, %v55_v27  ;;  %v57_v30 = vld [vmem:[#allocation5 + $0x98] sm:$0xff]  ;;  %v58_v31 = vld [vmem:[#allocation5 + $0xa0] sm:$0xff]  ;;  %v233_v38 = vld [vmem:[#allocation5 + $0xa8] ss:$0 sm:$0xff] }
  0x2e   :  { %307 = vmatpush3.bf16.msra.mxu0 %v306_v11  ;;  %v330_v32 = vpack.c.bf16 %v58_v31, %v57_v30  ;;  %v231_v33 = vld [vmem:[#allocation5 + $0x20] ss:$0 sm:$0xff]  ;;  %p392_p6 = pnand %p391_p5, %p385_p2 }
  0x2f   :  { %313 = vmatpush3.bf16.msra.mxu1 %v312_v13 }
  0x30   :  { %314 = vmatprep.subr.bf16.mxu1 %v416_v0 }
  0x31   :  { %265 = vmatmul.mubr.msk.f32.vlgmr.msra.gmra.mrb[0].mxu0 %vm65_vm1, %v60_v16 }
  0x33   :  { %316 = vmatpush3.bf16.msra.mxu1 %v315_v17 }
  0x34   :  { %317 = vmatprep.subr.bf16.mxu1 %v416_v0 }
  0x37   :  { %319 = vmatpush3.bf16.msra.mxu1 %v318_v20 }
  0x38   :  { %320 = vmatprep.subr.bf16.mxu1 %v416_v0 }
  0x3b   :  { %322 = vmatpush3.bf16.msra.mxu1 %v321_v23 }
  0x3c   :  { %323 = vmatprep.subr.bf16.mxu1 %v416_v0 }
  0x3f   :  { %325 = vmatpush3.bf16.msra.mxu1 %v324_v26 }
  0x40   :  { %326 = vmatprep.subr.bf16.mxu1 %v416_v0 }
  0x43   :  { %328 = vmatpush3.bf16.msra.mxu1 %v327_v29 }
  0x44   :  { %329 = vmatprep.subr.bf16.mxu1 %v416_v0 }
  0x47   :  { %331 = vmatpush3.bf16.msra.mxu1 %v330_v32 }
 0x104   :  { %v135_v34 = vpop.f32.mrb[0].mxu0 }
 0x105   :  { %v136_v35 = vadd.f32 %v231_v33, %v135_v34  ;;  %v266_v36 = vpop.f32.mrb[1].mxu0 }
 0x107   :  { %v139_v37 = vmax.f32 %v136_v35, 0.0 }
 0x109   :  { %300 = vmatmul.mubr.f32.vlgmr.msra.gmra.mrb[0].mxu1 %v139_v37 }
 0x1dc   :  { %v210_v39 = vpop.f32.mrb[0].mxu1 }
 0x1dd   :  { %v211_v40 = vadd.f32 %v233_v38, %v210_v39  ;;  %v301_v41 = vpop.f32.mrb[1].mxu1 }
 0x1df   :  { %214 = vst [vmem:[#allocation7] sm:$0xff] %v211_v40 }
 0x1e0   :  { %395 = shalt.err (!%p392_p6)
}
 0x1e1   :  { %s396_s10 = scalar_lea.hbm %s480_s2, 128 }
 0x1e2   :  { %p397_p7 = scmp.ne.s32.totalorder %s480_s2, %s396_s10  ;;  %p400_p8 = scmp.lt.u32.totalorder %s396_s10, %s480_s2 }
 0x1e4   :  { %p402_p9 = pnand %p400_p8, %p397_p7 }
 0x1e6   :  { %405 = shalt.err (!%p402_p9)
}
 0x1e7   :  { %224 = dma.vmem_to_hbm [thread:$0]  %s222_s6, 128, %s480_s2, [#allocation4]  }
 0x1e8   :  { %410 = dma.done.wait [#allocation4], 128  }
 0x1e9   :  { %411 = vsyncadd [#allocation4], 4294967168 }
 0x1ea   :  { %228 = vsyncpa [#allocation3], 1 }
 0x1eb   :  { %229 = vsyncpa [#allocation6], 1 }
 0x1ec   :  { %230 = vsyncpa [#allocation4], 1 }

</bundles_post_ra>
